<compile_context>
chip_gen: v7x
topology: tpu7x:2x2x1
jax: 0.10.0
libtpu: 0.0.40
codegen_flags: <defaults>
</compile_context>

<pallas_src>
import jax
import jax.numpy as jnp
from jax import lax
from jax.experimental import pallas as pl
from jax.experimental.pallas import tpu as pltpu

EPS = 1e-8
_LANE = 128


def _cosine_sim_kernel(p_ref, pinv_ref, x_ref, o_ref):
    """One (batch, spatial-tile) grid step.

    p_ref:    (K, C)        prototype matrix (native input dtype)
    pinv_ref: (K, 1)  f32   precomputed 1 / max(||p||, eps)
    x_ref:    (1, C, t_hw)  feature tile: channels on sublanes, pixels on lanes
    o_ref:    (1, K, t_hw)  similarity tile (lane-dense output)
    """
    x = x_ref[0]                                                      # (C, t_hw)
    # MXU matmul in native input dtype, f32 accumulation.
    dots = jnp.dot(p_ref[...], x, preferred_element_type=jnp.float32)  # (K, t_hw)

    xf = x.astype(jnp.float32)
    x_sq = jnp.sum(xf * xf, axis=0, keepdims=True)                    # (1, t_hw)
    # 1 / max(||x||, eps): rsqrt over only t_hw elements (EUP slot).
    inv_x = lax.rsqrt(jnp.maximum(x_sq, EPS * EPS))                   # (1, t_hw)

    o_ref[0] = (dots * inv_x * pinv_ref[...]).astype(o_ref.dtype)


def _vmem_capacity_bytes():
    try:
        return int(pltpu.get_tpu_info().vmem_capacity_bytes)
    except Exception:
        return 64 << 20  # conservative: v7x per-TensorCore physical VMEM


def _pick_spatial_tile(hw, B, C, K, in_bytes,
                       *, target_step_bytes=4 << 20, min_grid_steps=4):
    """Pick (t_hw, hw_padded).

    t_hw is a multiple of 128 sized so each grid step moves roughly
    `target_step_bytes` of HBM traffic, capped so the double-buffered tiles use
    <= ~40% of this generation's VMEM, and shrunk (when possible) so the grid
    has >= min_grid_steps steps for megacore sharding / pipeline depth.
    """
    hw128 = pl.cdiv(hw, _LANE) * _LANE
    cap = _vmem_capacity_bytes()

    pix_hbm = C * in_bytes + K * 4                       # HBM bytes per pixel
    pix_vmem = 2 * (C * in_bytes + K * 4) + (K + 2) * 4  # double-buffered + temps

    t = target_step_bytes // pix_hbm
    t = min(t, int(cap * 0.4) // pix_vmem)
    t = max(_LANE, (t // _LANE) * _LANE)
    t = min(t, hw128)

    # Megacore occupancy / pipeline depth: aim for >= min_grid_steps grid steps
    # when the problem is large enough to allow it.
    if B * (hw128 // _LANE) >= min_grid_steps:
        while t > _LANE and B * pl.cdiv(hw128, t) < min_grid_steps:
            t = max(_LANE, ((t // 2) // _LANE) * _LANE)

    hw_padded = pl.cdiv(hw, t) * t
    return int(t), int(hw_padded)


@jax.jit
def global_prototype_forward(features, prototypes):
    """features: (B, C, H, W); prototypes: (K, C) -> (B, K, H, W) float32."""
    B, C, H, W = features.shape
    K = prototypes.shape[0]
    HW = H * W
    in_bytes = jnp.dtype(features.dtype).itemsize

    t_hw, hw_pad = _pick_spatial_tile(HW, B, C, K, in_bytes)

    x = features.reshape(B, C, HW)                      # metadata-only reshape
    if hw_pad != HW:
        # Zero-pad the spatial axis up to a tile multiple (sliced off below).
        x = jnp.pad(x, ((0, 0), (0, 0), (0, hw_pad - HW)))

    # Prototypes in the matmul's input dtype; inverse norms hoisted (tiny, f32).
    p = prototypes.astype(features.dtype)
    p_f32 = prototypes.astype(jnp.float32)
    p_inv = lax.rsqrt(
        jnp.maximum(jnp.sum(p_f32 * p_f32, axis=-1, keepdims=True), EPS * EPS)
    )                                                    # (K, 1)

    cap = _vmem_capacity_bytes()
    grid = (B, hw_pad // t_hw)

    sims = pl.pallas_call(
        _cosine_sim_kernel,
        out_shape=jax.ShapeDtypeStruct((B, K, hw_pad), jnp.float32),
        grid_spec=pltpu.PrefetchScalarGridSpec(
            num_scalar_prefetch=0,
            grid=grid,
            in_specs=[
                pl.BlockSpec((K, C), lambda b, j: (0, 0)),        # prototypes
                pl.BlockSpec((K, 1), lambda b, j: (0, 0)),        # 1/||p||
                pl.BlockSpec((1, C, t_hw), lambda b, j: (b, 0, j)),
            ],
            out_specs=pl.BlockSpec((1, K, t_hw), lambda b, j: (b, 0, j)),
        ),
        compiler_params=pltpu.CompilerParams(
            dimension_semantics=("parallel", "parallel"),
            vmem_limit_bytes=min(int(cap * 0.75), 96 << 20),
        ),
        cost_estimate=pl.CostEstimate(
            flops=2 * B * K * C * hw_pad,
            transcendentals=B * hw_pad,
            bytes_accessed=(B * C * hw_pad * in_bytes
                            + B * K * hw_pad * 4
                            + K * (C + 1) * 4),
        ),
    )(p, p_inv, x)

    if hw_pad != HW:
        sims = sims[:, :, :HW]
    return sims.reshape(B, K, H, W)                      # metadata-only reshape


def _reference_forward(features, prototypes):
    B, C, H, W = features.shape
    x = jnp.transpose(features, (0, 2, 3, 1)).reshape(B * H * W, C).astype(jnp.float32)
    p = prototypes.astype(jnp.float32)
    dots = x @ p.T
    denom = jnp.sqrt(
        jnp.maximum(
            jnp.sum(x * x, -1, keepdims=True) * jnp.sum(p * p, -1)[None, :],
            EPS * EPS,
        )
    )
    sims = dots / denom
    K = prototypes.shape[0]
    return jnp.transpose(sims.reshape(B, H, W, K), (0, 3, 1, 2))


if __name__ == "__main__":
    # Small shapes consistent with the module: feature_dim=C, num_classes=K.
    B, C, H, W = 2, 32, 16, 16
    num_classes = 8

    key = jax.random.PRNGKey(0)
    k_feat, k_proto = jax.random.split(key)

    features = jax.random.normal(k_feat, (B, C, H, W), dtype=jnp.float32)
    # nn.init.normal_(std=0.02) equivalent, deterministic.
    global_prototypes = 0.02 * jax.random.normal(
        k_proto, (num_classes, C), dtype=jnp.float32
    )

    out = global_prototype_forward(features, global_prototypes)
    out = jax.block_until_ready(out)

    ref = _reference_forward(features, global_prototypes)
    assert out.shape == (B, num_classes, H, W)
    assert jnp.allclose(out, ref, atol=1e-5, rtol=1e-5)

    print("KERNEL_OK")
</pallas_src>

<mosaic_0001>
module attributes {stable_mosaic.version = 11 : i64} {
  func.func @_cosine_sim_kernel(%arg0: i32, %arg1: i32, %arg2: memref<8x32xf32, #tpu.memory_space<vmem>>, %arg3: memref<8x1xf32, #tpu.memory_space<vmem>>, %arg4: memref<1x32x128xf32, #tpu.memory_space<vmem>>, %arg5: memref<1x8x128xf32, #tpu.memory_space<vmem>>) attributes {dimension_semantics = [#tpu.dimension_semantics<parallel>, #tpu.dimension_semantics<parallel>], iteration_bounds = array<i64: 2, 2>, scalar_prefetch = 0 : i64, scratch_operands = 0 : i64, tpu.core_type = #tpu.core_type<tc>, window_params = [{pipeline_mode = #tpu.pipeline_mode<synchronous>, transform_indices = @transform_0, window_bounds = array<i64: 8, 32>}, {pipeline_mode = #tpu.pipeline_mode<synchronous>, transform_indices = @transform_1, window_bounds = array<i64: 8, 1>}, {transform_indices = @transform_2, window_bounds = array<i64: 1, 32, 128>}, {transform_indices = @transform_3, window_bounds = array<i64: 1, 8, 128>}]} {
    %c0 = arith.constant 0 : index
    %c0_0 = arith.constant 0 : index
    %c0_1 = arith.constant 0 : index
    %0 = vector.load %arg4[%c0, %c0_0, %c0_1] : memref<1x32x128xf32, #tpu.memory_space<vmem>>, vector<1x32x128xf32>
    %1 = vector.shape_cast %0 : vector<1x32x128xf32> to vector<32x128xf32>
    %c0_2 = arith.constant 0 : index
    %c0_3 = arith.constant 0 : index
    %2 = vector.load %arg2[%c0_2, %c0_3] : memref<8x32xf32, #tpu.memory_space<vmem>>, vector<8x32xf32>
    %cst = arith.constant dense<0.000000e+00> : vector<8x128xf32>
    %3 = tpu.matmul %2, %1, %cst {dimension_numbers = #tpu.dot_dimension_numbers<[1], [0], [0], [1], [0, 0, 1, 1], [], []>} : vector<8x32xf32>, vector<32x128xf32>, vector<8x128xf32> -> vector<8x128xf32>
    %4 = arith.mulf %1, %1 : vector<32x128xf32>
    %cst_4 = arith.constant dense<0.000000e+00> : vector<128xf32>
    %5 = vector.multi_reduction <add>, %4, %cst_4 [0] : vector<32x128xf32> to vector<128xf32>
    %6 = vector.shape_cast %5 : vector<128xf32> to vector<1x128xf32>
    %cst_5 = arith.constant 1.000000e-16 : f32
    %7 = vector.broadcast %cst_5 : f32 to vector<1x128xf32>
    %8 = arith.maximumf %6, %7 : vector<1x128xf32>
    %9 = math.rsqrt %8 : vector<1x128xf32>
    %10 = vector.broadcast %9 : vector<1x128xf32> to vector<8x128xf32>
    %11 = arith.mulf %3, %10 : vector<8x128xf32>
    %c0_6 = arith.constant 0 : index
    %c0_7 = arith.constant 0 : index
    %12 = vector.load %arg3[%c0_6, %c0_7] : memref<8x1xf32, #tpu.memory_space<vmem>>, vector<8x1xf32>
    %13 = vector.broadcast %12 : vector<8x1xf32> to vector<8x128xf32>
    %14 = arith.mulf %11, %13 : vector<8x128xf32>
    %c0_8 = arith.constant 0 : index
    %c0_9 = arith.constant 0 : index
    %c0_10 = arith.constant 0 : index
    %15 = vector.load %arg5[%c0_8, %c0_9, %c0_10] : memref<1x8x128xf32, #tpu.memory_space<vmem>>, vector<1x8x128xf32>
    %16 = vector.shape_cast %15 : vector<1x8x128xf32> to vector<8x128xf32>
    %17 = vector.shape_cast %14 : vector<8x128xf32> to vector<1x8x128xf32>
    tpu.vector_store %arg5[%c0_8, %c0_9, %c0_10], %17 {strides = array<i32>} : memref<1x8x128xf32, #tpu.memory_space<vmem>>, vector<1x8x128xf32>,
    return
  }
  func.func @transform_0(%arg0: i32, %arg1: i32) -> (i32, i32) {
    %c0_i32 = arith.constant 0 : i32
    %c0_i32_0 = arith.constant 0 : i32
    %c0_i32_1 = arith.constant 0 : i32
    return %c0_i32, %c0_i32_0 : i32, i32
  }
  func.func @transform_1(%arg0: i32, %arg1: i32) -> (i32, i32) {
    %c0_i32 = arith.constant 0 : i32
    %c0_i32_0 = arith.constant 0 : i32
    %c0_i32_1 = arith.constant 0 : i32
    return %c0_i32, %c0_i32_0 : i32, i32
  }
  func.func @transform_2(%arg0: i32, %arg1: i32) -> (i32, i32, i32) {
    %c0_i32 = arith.constant 0 : i32
    %c0_i32_0 = arith.constant 0 : i32
    return %arg0, %c0_i32, %arg1 : i32, i32, i32
  }
  func.func @transform_3(%arg0: i32, %arg1: i32) -> (i32, i32, i32) {
    %c0_i32 = arith.constant 0 : i32
    %c0_i32_0 = arith.constant 0 : i32
    return %arg0, %c0_i32, %arg1 : i32, i32, i32
  }
}

</mosaic_0001>

<bundles_post_ra>
// kernel: global_prototype_forward.1
= control target key start
LH: loop header
LB: loop body
LE: loop exit
PB: predicated region body
PF: predicated region fallthrough
CT: control target
= control target key end

     0   :  { %s611_s12 = smov 0   ;;  %s613_s13 = smov 0   ;;  %s708_s0 = inlined_call_operand.vmem [shape: f32[8,32], index: 0, kind: input, shape index: {}]   ;;  %s709_s1 = inlined_call_operand.vmem [shape: f32[8,1], index: 1, kind: input, shape index: {}]   ;;  %s710_s2 = inlined_call_operand.vmem [shape: f32[2,32,256], index: 2, kind: input, shape index: {}]   ;;  %s711_s3 = inlined_call_operand.vmem [shape: f32[2,8,256], index: 3, kind: output, shape index: {}]  }
   0x1   :  { %s615_s14 = smov 0   ;;  %s617_s15 = smov 0  }
   0x2   :  { %s619_s16 = smov 0   ;;  %s621_s17 = smov 0  }
   0x3   :  { %s623_s18 = smov 0  }
   0x4 LB: > { %s22_s19 = sadd.s32 1, %s577_s16  ;;  %s25_s20 = sadd.s32 1, %s581_s17  ;;  %s585_s18 = sphi %s623_s18, %s13_s18   ;;  %s581_s17 = sphi %s621_s17, %s717_s17   ;;  %s577_s16 = sphi %s619_s16, %s716_s16   ;;  %s573_s15 = sphi %s617_s15, %s715_s15   ;;  %s569_s14 = sphi %s615_s14, %s714_s14   ;;  %s565_s13 = sphi %s613_s13, %s713_s13   ;;  %s561_s12 = sphi %s611_s12, %s712_s12  }
   0x5   : > { %p23_p0 = scmp.ge.s32.totalorder %s22_s19, 2  ;;  %p83_p1 = scmp.ne.s32.totalorder %s565_s13, %s561_s12 }
   0x6   : > { %p84_p2 = scmp.eq.s32.totalorder %s585_s18, 0  ;;  %s76_s24 = sadd.s32 1, %s565_s13 }
   0x7   : > { %s719_s19 = smov (%p23_p0, %s22_s19), 0  ;;  %s721_s20 = smov (!%p23_p0, %s25_s20), %s581_s17 }
   0x8   : > { %p85_p3 = por %p84_p2, %p83_p1  ;;  %p27_p4 = scmp.ge.s32.totalorder %s721_s20, 2 }
   0x9   : > { %s72_s21 = ssub.s32 %s577_s16, %s719_s19  ;;  %p435_p6 = scmp.ge.s32.totalorder %s585_s18, 4 }
   0xa   : > { %s723_s20 = smov (%p27_p4, %s721_s20), 0 }
   0xb   : > { %s71_s22 = ssub.s32 %s581_s17, %s723_s20  ;;  %143 = sbr.rel (%p435_p6) target bundleno = 26 (0x1a), region = 24 }
   0xc   : > { %s73_s23 = sor.u32 %s72_s21, %s71_s22 }
   0xd   : > { %p74_p5 = scmp.eq.s32.totalorder %s73_s23, 0 }
   0xf   : > { %s662_s25 = scalar_select %p74_p5, %s565_s13, %s76_s24  }
  0x12   : > { %146 = sbr.rel (!%p85_p3) target bundleno = 26 (0x1a), region = 28  ;;  %s148_s26 = sand.u32 (%p85_p3), 1, %s565_s13  }
  0x13   : > { %s437_s27 = sshll.u32 (%p85_p3), %s581_s17, 3  ;;  %s436_s28 = sshll.u32 (%p85_p3), %s148_s26, 5 }
  0x14   : > { %s152_s29 = sadd.s32 (%p85_p3), %s577_s16, %s437_s27  ;;  %s150_s7 = scalar_lea.vmem (%p85_p3), [#allocation2], %s436_s28 }
  0x15   : > { %s438_s30 = sshll.u32 (%p85_p3), %s152_s29, 3 }
  0x16   : > { %s154_s6 = scalar_lea.vmem (%p85_p3), %s710_s2, %s438_s30 }
  0x17   : > { %v188_v0 = vld [vmem:[%s154_s6] sm:$0xff] (%p85_p3)  ;;  %v190_v1 = vld [vmem:[%s154_s6 + $0x10] sm:$0xff] (%p85_p3) }
  0x18   : > { %v192_v2 = vld [vmem:[%s154_s6 + $0x20] sm:$0xff] (%p85_p3)  ;;  %189 = vst [vmem:[%s150_s7] sm:$0xff] (%p85_p3), %v188_v0  ;;  %191 = vst [vmem:[%s150_s7 + $0x8] sm:$0xff] (%p85_p3), %v190_v1  ;;  %v194_v3 = vld [vmem:[%s154_s6 + $0x30] sm:$0xff] (%p85_p3) }
  0x19   : > { %193 = vst [vmem:[%s150_s7 + $0x10] sm:$0xff] %v192_v2  ;;  %195 = vst [vmem:[%s150_s7 + $0x18] sm:$0xff] %v194_v3 }
  0x1a PF: > { %p439_p7 = scmp.ge.s32.totalorder %s585_s18, 1  ;;  %p200_p8 = scmp.lt.s32.totalorder %s585_s18, 5 }
  0x1c   : > { %p201_p9 = pnand %p439_p7, %p200_p8 }
  0x1d   : > { %s207_s8 = sand.u32 (!%p201_p9), 1, %s561_s12   ;;  %v587_v4 = vmov (!%p201_p9), 0.0|0.0   ;;  %vm588_vm0 = vmmov (!%p201_p9), 0   ;;  %v589_v5 = vmov (!%p201_p9), 0.0   ;;  %v336_v6 = vld [vmem:[%s709_s1] sm:$0xff] (!%p201_p9)  ;;  %v590_v7 = vmov (!%p201_p9), 0  }
  0x1e   : > { %204 = sbr.rel (%p201_p9) target bundleno = 259 (0x103), region = 66  ;;  %462 = vmatprep.subr.bf16.mxu0 (!%p201_p9), %v587_v4  ;;  %s440_s9 = sshll.u32 (!%p201_p9), %s207_s8, 5  ;;  %459 = vmatprep.mubr.msk.f32.mxu0 (!%p201_p9), %vm588_vm0, %v589_v5  ;;  %v245_v21 = vld [vmem:[%s708_s0] sm:$0xff] (!%p201_p9)  ;;  %vm246_vm1 = vcmask (!%p201_p9), 261120  }
  0x1f   : > { %528 = vset.pattern.permute.xlu0 (!%p201_p9), %v590_v7  ;;  %s209_s21 = scalar_lea.vmem (!%p201_p9), [#allocation2], %s440_s9  ;;  %p233_p10 = scmp.lt.s32.totalorder (!%p201_p9), %s573_s15, 1 }
  0x20   : > { %v241_v8 = vld [vmem:[%s209_s21] sm:$0xff] (!%p201_p9)  ;;  %v242_v9 = vld [vmem:[%s209_s21 + $0x8] sm:$0xff] (!%p201_p9)  ;;  %v243_v10 = vld [vmem:[%s209_s21 + $0x10] sm:$0xff] (!%p201_p9)  ;;  %339 = vperm.xlu0 (!%p201_p9), %528, %v336_v6   ;;  %p235_p11 = scmp.lt.s32.totalorder (!%p201_p9), %s569_s14, 1 }
  0x21   : > { %v463_v11 = vpack.c.bf16 (!%p201_p9), %v242_v9, %v241_v8  ;;  %v320_v12 = vmul.f32 (!%p201_p9), %v241_v8, %v241_v8  ;;  %v321_v13 = vmul.f32 (!%p201_p9), %v242_v9, %v242_v9  ;;  %v244_v14 = vld [vmem:[%s209_s21 + $0x18] sm:$0xff] (!%p201_p9)  ;;  %v322_v15 = vmul.f32 (!%p201_p9), %v243_v10, %v243_v10 }
  0x22   : > { %v466_v17 = vpack.c.bf16 (!%p201_p9), %v244_v14, %v243_v10  ;;  %v323_v18 = vmul.f32 (!%p201_p9), %v244_v14, %v244_v14 }
  0x23   : > { %464 = vmatpush3.bf16.msra.mxu0 (!%p201_p9), %v463_v11  ;;  %v324_v16 = vadd.f32 (!%p201_p9), %v321_v13, %v320_v12 }
  0x24   : > { %465 = vmatprep.subr.bf16.mxu0 (!%p201_p9), %v587_v4 }
  0x25   : > { %v325_v19 = vadd.f32 %v324_v16, %v322_v15  ;;  %s725_s15 = smov (!%p233_p10, %s573_s15), 1  ;;  %s727_s14 = smov (!%p235_p11, %s569_s14), 1 }
  0x26   : > { %s441_s23 = sshll.u32 %s725_s15, 1 }
  0x27   : > { %467 = vmatpush3.bf16.msra.mxu0 %v466_v17  ;;  %v326_v20 = vadd.f32 %v325_v19, %v323_v18  ;;  %s238_s24 = sadd.s32 %s441_s23, %s727_s14 }
  0x28   : > { %s442_s26 = sshll.u32 %s238_s24, 3 }
  0x29   : > { %v327_v22 = vrot.slane %v326_v20, 4  ;;  %s240_s29 = scalar_lea.vmem %s711_s3, %s442_s26 }
  0x2a   : > { %460 = vmatmul.mubr.msk.f32.vlgmr.msra.gmra.mrb[0].mxu0 %vm246_vm1, %v245_v21 }
  0x2b   : > { %v328_v23 = vadd.f32 %v327_v22, %v326_v20 }
  0x2d   : > { %v329_v24 = vrot.slane %v328_v23, 2 }
  0x2f   : > { %v330_v25 = vadd.f32 %v329_v24, %v328_v23 }
  0x31   : > { %v331_v26 = vrot.slane %v330_v25, 1 }
  0x33   : > { %v332_v27 = vadd.f32 %v331_v26, %v330_v25 }
  0x35   : > { %v333_v28 = vmax.f32 %v332_v27, 1e-16 }
  0x37   : > { %529 = vrsqrt.f32 %v333_v28 }
  0x41   : > { %v530_v29 = vpop.eup %529 }
  0x9f   : > { %v340_v31 = vpop.permute.xlu0 %339 }
  0xfd   : > { %v316_v30 = vpop.f32.mrb[0].mxu0 }
  0xfe   : > { %v335_v32 = vmul.f32 %v530_v29, %v316_v30  ;;  %v461_v33 = vpop.f32.mrb[1].mxu0 }
 0x100   : > { %v342_v34 = vmul.f32 %v340_v31, %v335_v32 }
 0x102   : > { %343 = vst [vmem:[%s240_s29] sm:$0xff] %v342_v34 }
 0x103 PF: > { %s13_s18 = sadd.s32 1, %s585_s18   ;;  %s712_s12 = smov %s565_s13 }
 0x104   : > { %p10_p12 = scmp.ge.s32.totalorder %s13_s18, 6   ;;  %s713_s13 = smov %s662_s25 }
 0x105   : > { %s714_s14 = smov %s577_s16  ;;  %s715_s15 = smov %s581_s17 }
 0x106   : > { %s716_s16 = smov %s719_s19  ;;  %s717_s17 = smov %s723_s20 }
 0x107   :  { %12 = sbr.rel (!%p10_p12) target bundleno = 4 (0x4), region = 105 }

</bundles_post_ra>
